<compile_context>
chip_gen: v7x
topology: tpu7x:2x2x1
jax: 0.10.0
libtpu: 0.0.40
codegen_flags: <defaults>
</compile_context>

<pallas_src>
import jax
import jax.numpy as jnp
from jax.experimental import pallas as pl
from jax.experimental.pallas import tpu as pltpu


def _round_up(x, mult):
    return ((x + mult - 1) // mult) * mult


def _mode_mix_kernel(xr_ref, xi_ref, wr_ref, wi_ref, out_ref):
    """Complex contraction over in_channels for one frequency block.

    Block shapes seen by the kernel (leading factor dim squeezed away):
      xr/xi : (Cin*B,    M_pad)   rows are input-channel-major (i, b)
      wr/wi : (Cin*Cout, M_pad)   rows are input-channel-major (i, o)
      out   : (B, 2*Cout, M_pad)  rows [:Cout] = real, [Cout:] = imag
    Computes out[b, o, m] = sum_i x[b, i, m] * w[i, o, m]   (complex, f32).
    """
    batch, two_cout, _ = out_ref.shape
    cout = two_cout // 2
    cin = xr_ref.shape[0] // batch

    def cross_terms(i):
        # Contiguous static row slices (i-major layouts) -> dense (8,128) loads.
        xr_i = xr_ref[i * batch:(i + 1) * batch, :][:, None, :]   # (B, 1, Mp)
        xi_i = xi_ref[i * batch:(i + 1) * batch, :][:, None, :]
        wr_i = wr_ref[i * cout:(i + 1) * cout, :][None, :, :]     # (1, Cout, Mp)
        wi_i = wi_ref[i * cout:(i + 1) * cout, :][None, :, :]
        t_r = xr_i * wr_i - xi_i * wi_i
        t_i = xr_i * wi_i + xi_i * wr_i
        return t_r, t_i

    # Static per-channel accumulation: only the two accumulators and the
    # current i-term slabs are live (O(1) in Cin, no broadcast blow-up).
    acc_r, acc_i = cross_terms(0)
    for i in range(1, cin):
        t_r, t_i = cross_terms(i)
        acc_r = acc_r + t_r
        acc_i = acc_i + t_i

    # Real rows then imag rows; together they fill the dense (2*Cout, M_pad)
    # sublane/lane tile, so the HBM writeback is one dense stream.
    out_ref[:, :cout, :] = acc_r
    out_ref[:, cout:, :] = acc_i


def spectral_mode_mix(xr, xi, wr, wi, *, batch, out_channels):
    """Fused mode mixing for both frequency blocks.

    xr/xi : (2, Cin*B,    M_pad) float32 (factor-stacked, channel-major rows)
    wr/wi : (2, Cin*Cout, M_pad) float32
    returns (2, B, 2*Cout, M_pad) float32 — real rows [:Cout], imag [Cout:].
    """
    nf, cin_b, m_pad = xr.shape
    cin_cout = wr.shape[1]

    x_spec = pl.BlockSpec((None, cin_b, m_pad), lambda f: (f, 0, 0))
    w_spec = pl.BlockSpec((None, cin_cout, m_pad), lambda f: (f, 0, 0))
    o_spec = pl.BlockSpec((None, batch, 2 * out_channels, m_pad),
                          lambda f: (f, 0, 0, 0))

    # NOTE: per-step VMEM here is ~64 KB.  For production FNO channel counts
    # (Cin/Cout ~ 64, B ~ 32) add a grid axis tiling m_pad in 128/256-lane
    # chunks (keeps >=2 parallel steps for v7x's two TensorCores) and pass
    # pltpu.CompilerParams(vmem_limit_bytes=...) to stay inside v7x's 64 MiB.
    return pl.pallas_call(
        _mode_mix_kernel,
        out_shape=jax.ShapeDtypeStruct((nf, batch, 2 * out_channels, m_pad),
                                       jnp.float32),
        grid=(nf,),
        in_specs=[x_spec, x_spec, w_spec, w_spec],
        out_specs=o_spec,
        compiler_params=pltpu.CompilerParams(
            dimension_semantics=("parallel",)),
    )(xr, xi, wr, wi)


class SpectralConv2dPallas:
    """JAX/Pallas port of geo-FNO SpectralConv2d (x_in=None, x_out=None path)."""

    def __init__(self, in_channels, out_channels, modes1, modes2,
                 s1=32, s2=32, key=None):
        self.in_channels = in_channels
        self.out_channels = out_channels
        self.modes1 = modes1
        self.modes2 = modes2
        self.s1 = s1
        self.s2 = s2
        if modes1 > s1 or modes2 > s2 // 2 + 1:
            raise ValueError(
                f"modes ({modes1},{modes2}) do not fit in spectrum of "
                f"({s1},{s2 // 2 + 1})")

        scale = 1.0 / (in_channels * out_channels)
        if key is None:
            key = jax.random.PRNGKey(0)
        k1, k2, k3, k4 = jax.random.split(key, 4)
        shape = (in_channels, out_channels, modes1, modes2)
        # torch.rand(..., dtype=cfloat): real & imag each ~ U[0,1), scaled.
        self.w1_r = scale * jax.random.uniform(k1, shape, jnp.float32)
        self.w1_i = scale * jax.random.uniform(k2, shape, jnp.float32)
        self.w2_r = scale * jax.random.uniform(k3, shape, jnp.float32)
        self.w2_i = scale * jax.random.uniform(k4, shape, jnp.float32)

        # Flatten modes and zero-pad the lane axis to a 128 multiple ONCE, at
        # init, so the kernel never touches masked lane tiles for weights.
        self.m_flat = modes1 * modes2
        self.m_pad = max(128, _round_up(self.m_flat, 128))
        pad = self.m_pad - self.m_flat

        def _prep(w):  # (Cin, Cout, m1, m2) -> (Cin*Cout, M_pad), i-major rows
            w2d = w.reshape(in_channels * out_channels, self.m_flat)
            return jnp.pad(w2d, ((0, 0), (0, pad)))

        # (2, Cin*Cout, M_pad); factor 0 = weights1 (low modes), 1 = weights2.
        self.w_stack_r = jnp.stack([_prep(self.w1_r), _prep(self.w2_r)], axis=0)
        self.w_stack_i = jnp.stack([_prep(self.w1_i), _prep(self.w2_i)], axis=0)

    def __call__(self, u):
        """u: (B, Cin, H, W) float32 -> (B, Cout, H, W) float32 (NCHW)."""
        batch, cin, s1, s2 = u.shape
        m1, m2 = self.modes1, self.modes2
        s2h = s2 // 2 + 1
        if m1 > s1 or m2 > s2h:
            raise ValueError(
                f"modes ({m1},{m2}) do not fit in rfft2 spectrum ({s1},{s2h})")
        m_flat, m_pad = self.m_flat, self.m_pad
        cout = self.out_channels
        # NOTE: if s1 < 2*m1 the :m1 and -m1: output regions overlap and the
        # high-mode block overwrites the low-mode block (mirrors PyTorch).

        # FFT (glue, no Pallas equivalent).
        u_ft = jnp.fft.rfft2(u)                       # (B, Cin, s1, s2h) c64

        def gather(part):
            # One fused transform per real/imag part:
            # slice both mode blocks -> stack factors -> channel-major rows ->
            # flatten modes -> pad lanes.  Output (2, Cin*B, M_pad) float32.
            lo = part[:, :, :m1, :m2]
            hi = part[:, :, s1 - m1:, :m2]
            x = jnp.stack([lo, hi], axis=0)                     # (2,B,Cin,m1,m2)
            x = jnp.transpose(x, (0, 2, 1, 3, 4)).reshape(2, cin * batch, m_flat)
            return jnp.pad(x, ((0, 0), (0, 0), (0, m_pad - m_flat)))

        xr = gather(jnp.real(u_ft))
        xi = gather(jnp.imag(u_ft))

        # Fused Pallas mode mixing for both frequency blocks in one launch.
        out = spectral_mode_mix(xr, xi, self.w_stack_r, self.w_stack_i,
                                batch=batch, out_channels=cout)
        # (2, B, 2*Cout, M_pad): one complex recombine + the block scatter.
        out_c = jax.lax.complex(out[:, :, :cout, :m_flat],
                                out[:, :, cout:, :m_flat])
        out_c = out_c.reshape(2, batch, cout, m1, m2)

        out_ft = jnp.zeros((batch, cout, s1, s2h), jnp.complex64)
        out_ft = out_ft.at[:, :, :m1, :m2].set(out_c[0])
        out_ft = out_ft.at[:, :, -m1:, :m2].set(out_c[1])
        return jnp.fft.irfft2(out_ft, s=(s1, s2))


def _reference_forward(u, layer):
    """Pure-JAX reference mirroring the PyTorch forward (x_in=x_out=None)."""
    batch = u.shape[0]
    s1, s2 = u.shape[-2], u.shape[-1]
    m1, m2 = layer.modes1, layer.modes2
    u_ft = jnp.fft.rfft2(u)
    w1 = layer.w1_r + 1j * layer.w1_i
    w2 = layer.w2_r + 1j * layer.w2_i
    f1 = jnp.einsum('bixy,ioxy->boxy', u_ft[:, :, :m1, :m2], w1)
    f2 = jnp.einsum('bixy,ioxy->boxy', u_ft[:, :, -m1:, :m2], w2)
    out_ft = jnp.zeros((batch, layer.out_channels, s1, s2 // 2 + 1),
                       jnp.complex64)
    out_ft = out_ft.at[:, :, :m1, :m2].set(f1)
    out_ft = out_ft.at[:, :, -m1:, :m2].set(f2)
    return jnp.fft.irfft2(out_ft, s=(s1, s2))


if __name__ == "__main__":
    key = jax.random.PRNGKey(0)
    k_u, k_w = jax.random.split(key)

    # Small shapes consistent with the module: batch=2, in=out=4 channels,
    # 32x32 spatial grid (module default s1=s2=32), modes1=modes2=12.
    B, Cin, Cout, H, W = 2, 4, 4, 32, 32
    modes1, modes2 = 12, 12

    u = jax.random.normal(k_u, (B, Cin, H, W), dtype=jnp.float32)

    layer = SpectralConv2dPallas(Cin, Cout, modes1, modes2, s1=H, s2=W, key=k_w)

    fwd = jax.jit(layer.__call__)
    out = fwd(u)
    jax.block_until_ready(out)

    # Sanity-check against pure-JAX reference.
    ref = _reference_forward(u, layer)
    assert out.shape == (B, Cout, H, W)
    assert jnp.max(jnp.abs(out - ref)) < 1e-4, "Pallas output mismatch vs reference"

    print("KERNEL_OK")
</pallas_src>

<mosaic_0001>
module attributes {stable_mosaic.version = 11 : i64} {
  func.func @_mode_mix_kernel(%arg0: i32, %arg1: memref<1x8x256xf32, #tpu.memory_space<vmem>>, %arg2: memref<1x8x256xf32, #tpu.memory_space<vmem>>, %arg3: memref<1x16x256xf32, #tpu.memory_space<vmem>>, %arg4: memref<1x16x256xf32, #tpu.memory_space<vmem>>, %arg5: memref<1x2x8x256xf32, #tpu.memory_space<vmem>>) attributes {dimension_semantics = [#tpu.dimension_semantics<parallel>], iteration_bounds = array<i64: 2>, scalar_prefetch = 0 : i64, scratch_operands = 0 : i64, tpu.core_type = #tpu.core_type<tc>, window_params = [{transform_indices = @transform_0, window_bounds = array<i64: 1, 8, 256>}, {transform_indices = @transform_1, window_bounds = array<i64: 1, 8, 256>}, {transform_indices = @transform_2, window_bounds = array<i64: 1, 16, 256>}, {transform_indices = @transform_3, window_bounds = array<i64: 1, 16, 256>}, {transform_indices = @transform_4, window_bounds = array<i64: 1, 2, 8, 256>}]} {
    %c0 = arith.constant 0 : index
    %c0_0 = arith.constant 0 : index
    %c0_1 = arith.constant 0 : index
    %0 = vector.load %arg1[%c0, %c0_0, %c0_1] : memref<1x8x256xf32, #tpu.memory_space<vmem>>, vector<1x2x256xf32>
    %1 = vector.shape_cast %0 : vector<1x2x256xf32> to vector<2x256xf32>
    %2 = vector.shape_cast %1 : vector<2x256xf32> to vector<2x1x256xf32>
    %c0_2 = arith.constant 0 : index
    %c0_3 = arith.constant 0 : index
    %c0_4 = arith.constant 0 : index
    %3 = vector.load %arg2[%c0_2, %c0_3, %c0_4] : memref<1x8x256xf32, #tpu.memory_space<vmem>>, vector<1x2x256xf32>
    %4 = vector.shape_cast %3 : vector<1x2x256xf32> to vector<2x256xf32>
    %5 = vector.shape_cast %4 : vector<2x256xf32> to vector<2x1x256xf32>
    %c0_5 = arith.constant 0 : index
    %c0_6 = arith.constant 0 : index
    %c0_7 = arith.constant 0 : index
    %6 = vector.load %arg3[%c0_5, %c0_6, %c0_7] : memref<1x16x256xf32, #tpu.memory_space<vmem>>, vector<1x4x256xf32>
    %7 = vector.shape_cast %6 : vector<1x4x256xf32> to vector<4x256xf32>
    %8 = vector.shape_cast %7 : vector<4x256xf32> to vector<1x4x256xf32>
    %c0_8 = arith.constant 0 : index
    %c0_9 = arith.constant 0 : index
    %c0_10 = arith.constant 0 : index
    %9 = vector.load %arg4[%c0_8, %c0_9, %c0_10] : memref<1x16x256xf32, #tpu.memory_space<vmem>>, vector<1x4x256xf32>
    %10 = vector.shape_cast %9 : vector<1x4x256xf32> to vector<4x256xf32>
    %11 = vector.shape_cast %10 : vector<4x256xf32> to vector<1x4x256xf32>
    %12 = vector.broadcast %2 : vector<2x1x256xf32> to vector<2x4x256xf32>
    %13 = vector.broadcast %8 : vector<1x4x256xf32> to vector<2x4x256xf32>
    %14 = arith.mulf %12, %13 : vector<2x4x256xf32>
    %15 = vector.broadcast %5 : vector<2x1x256xf32> to vector<2x4x256xf32>
    %16 = vector.broadcast %11 : vector<1x4x256xf32> to vector<2x4x256xf32>
    %17 = arith.mulf %15, %16 : vector<2x4x256xf32>
    %18 = arith.subf %14, %17 : vector<2x4x256xf32>
    %19 = vector.broadcast %2 : vector<2x1x256xf32> to vector<2x4x256xf32>
    %20 = vector.broadcast %11 : vector<1x4x256xf32> to vector<2x4x256xf32>
    %21 = arith.mulf %19, %20 : vector<2x4x256xf32>
    %22 = vector.broadcast %5 : vector<2x1x256xf32> to vector<2x4x256xf32>
    %23 = vector.broadcast %8 : vector<1x4x256xf32> to vector<2x4x256xf32>
    %24 = arith.mulf %22, %23 : vector<2x4x256xf32>
    %25 = arith.addf %21, %24 : vector<2x4x256xf32>
    %c0_11 = arith.constant 0 : index
    %c2 = arith.constant 2 : index
    %c0_12 = arith.constant 0 : index
    %26 = vector.load %arg1[%c0_11, %c2, %c0_12] : memref<1x8x256xf32, #tpu.memory_space<vmem>>, vector<1x2x256xf32>
    %27 = vector.shape_cast %26 : vector<1x2x256xf32> to vector<2x256xf32>
    %28 = vector.shape_cast %27 : vector<2x256xf32> to vector<2x1x256xf32>
    %c0_13 = arith.constant 0 : index
    %c2_14 = arith.constant 2 : index
    %c0_15 = arith.constant 0 : index
    %29 = vector.load %arg2[%c0_13, %c2_14, %c0_15] : memref<1x8x256xf32, #tpu.memory_space<vmem>>, vector<1x2x256xf32>
    %30 = vector.shape_cast %29 : vector<1x2x256xf32> to vector<2x256xf32>
    %31 = vector.shape_cast %30 : vector<2x256xf32> to vector<2x1x256xf32>
    %c0_16 = arith.constant 0 : index
    %c4 = arith.constant 4 : index
    %c0_17 = arith.constant 0 : index
    %32 = vector.load %arg3[%c0_16, %c4, %c0_17] : memref<1x16x256xf32, #tpu.memory_space<vmem>>, vector<1x4x256xf32>
    %33 = vector.shape_cast %32 : vector<1x4x256xf32> to vector<4x256xf32>
    %34 = vector.shape_cast %33 : vector<4x256xf32> to vector<1x4x256xf32>
    %c0_18 = arith.constant 0 : index
    %c4_19 = arith.constant 4 : index
    %c0_20 = arith.constant 0 : index
    %35 = vector.load %arg4[%c0_18, %c4_19, %c0_20] : memref<1x16x256xf32, #tpu.memory_space<vmem>>, vector<1x4x256xf32>
    %36 = vector.shape_cast %35 : vector<1x4x256xf32> to vector<4x256xf32>
    %37 = vector.shape_cast %36 : vector<4x256xf32> to vector<1x4x256xf32>
    %38 = vector.broadcast %28 : vector<2x1x256xf32> to vector<2x4x256xf32>
    %39 = vector.broadcast %34 : vector<1x4x256xf32> to vector<2x4x256xf32>
    %40 = arith.mulf %38, %39 : vector<2x4x256xf32>
    %41 = vector.broadcast %31 : vector<2x1x256xf32> to vector<2x4x256xf32>
    %42 = vector.broadcast %37 : vector<1x4x256xf32> to vector<2x4x256xf32>
    %43 = arith.mulf %41, %42 : vector<2x4x256xf32>
    %44 = arith.subf %40, %43 : vector<2x4x256xf32>
    %45 = vector.broadcast %28 : vector<2x1x256xf32> to vector<2x4x256xf32>
    %46 = vector.broadcast %37 : vector<1x4x256xf32> to vector<2x4x256xf32>
    %47 = arith.mulf %45, %46 : vector<2x4x256xf32>
    %48 = vector.broadcast %31 : vector<2x1x256xf32> to vector<2x4x256xf32>
    %49 = vector.broadcast %34 : vector<1x4x256xf32> to vector<2x4x256xf32>
    %50 = arith.mulf %48, %49 : vector<2x4x256xf32>
    %51 = arith.addf %47, %50 : vector<2x4x256xf32>
    %52 = arith.addf %18, %44 : vector<2x4x256xf32>
    %53 = arith.addf %25, %51 : vector<2x4x256xf32>
    %c0_21 = arith.constant 0 : index
    %c4_22 = arith.constant 4 : index
    %c0_23 = arith.constant 0 : index
    %54 = vector.load %arg1[%c0_21, %c4_22, %c0_23] : memref<1x8x256xf32, #tpu.memory_space<vmem>>, vector<1x2x256xf32>
    %55 = vector.shape_cast %54 : vector<1x2x256xf32> to vector<2x256xf32>
    %56 = vector.shape_cast %55 : vector<2x256xf32> to vector<2x1x256xf32>
    %c0_24 = arith.constant 0 : index
    %c4_25 = arith.constant 4 : index
    %c0_26 = arith.constant 0 : index
    %57 = vector.load %arg2[%c0_24, %c4_25, %c0_26] : memref<1x8x256xf32, #tpu.memory_space<vmem>>, vector<1x2x256xf32>
    %58 = vector.shape_cast %57 : vector<1x2x256xf32> to vector<2x256xf32>
    %59 = vector.shape_cast %58 : vector<2x256xf32> to vector<2x1x256xf32>
    %c0_27 = arith.constant 0 : index
    %c8 = arith.constant 8 : index
    %c0_28 = arith.constant 0 : index
    %60 = vector.load %arg3[%c0_27, %c8, %c0_28] : memref<1x16x256xf32, #tpu.memory_space<vmem>>, vector<1x4x256xf32>
    %61 = vector.shape_cast %60 : vector<1x4x256xf32> to vector<4x256xf32>
    %62 = vector.shape_cast %61 : vector<4x256xf32> to vector<1x4x256xf32>
    %c0_29 = arith.constant 0 : index
    %c8_30 = arith.constant 8 : index
    %c0_31 = arith.constant 0 : index
    %63 = vector.load %arg4[%c0_29, %c8_30, %c0_31] : memref<1x16x256xf32, #tpu.memory_space<vmem>>, vector<1x4x256xf32>
    %64 = vector.shape_cast %63 : vector<1x4x256xf32> to vector<4x256xf32>
    %65 = vector.shape_cast %64 : vector<4x256xf32> to vector<1x4x256xf32>
    %66 = vector.broadcast %56 : vector<2x1x256xf32> to vector<2x4x256xf32>
    %67 = vector.broadcast %62 : vector<1x4x256xf32> to vector<2x4x256xf32>
    %68 = arith.mulf %66, %67 : vector<2x4x256xf32>
    %69 = vector.broadcast %59 : vector<2x1x256xf32> to vector<2x4x256xf32>
    %70 = vector.broadcast %65 : vector<1x4x256xf32> to vector<2x4x256xf32>
    %71 = arith.mulf %69, %70 : vector<2x4x256xf32>
    %72 = arith.subf %68, %71 : vector<2x4x256xf32>
    %73 = vector.broadcast %56 : vector<2x1x256xf32> to vector<2x4x256xf32>
    %74 = vector.broadcast %65 : vector<1x4x256xf32> to vector<2x4x256xf32>
    %75 = arith.mulf %73, %74 : vector<2x4x256xf32>
    %76 = vector.broadcast %59 : vector<2x1x256xf32> to vector<2x4x256xf32>
    %77 = vector.broadcast %62 : vector<1x4x256xf32> to vector<2x4x256xf32>
    %78 = arith.mulf %76, %77 : vector<2x4x256xf32>
    %79 = arith.addf %75, %78 : vector<2x4x256xf32>
    %80 = arith.addf %52, %72 : vector<2x4x256xf32>
    %81 = arith.addf %53, %79 : vector<2x4x256xf32>
    %c0_32 = arith.constant 0 : index
    %c6 = arith.constant 6 : index
    %c0_33 = arith.constant 0 : index
    %82 = vector.load %arg1[%c0_32, %c6, %c0_33] : memref<1x8x256xf32, #tpu.memory_space<vmem>>, vector<1x2x256xf32>
    %83 = vector.shape_cast %82 : vector<1x2x256xf32> to vector<2x256xf32>
    %84 = vector.shape_cast %83 : vector<2x256xf32> to vector<2x1x256xf32>
    %c0_34 = arith.constant 0 : index
    %c6_35 = arith.constant 6 : index
    %c0_36 = arith.constant 0 : index
    %85 = vector.load %arg2[%c0_34, %c6_35, %c0_36] : memref<1x8x256xf32, #tpu.memory_space<vmem>>, vector<1x2x256xf32>
    %86 = vector.shape_cast %85 : vector<1x2x256xf32> to vector<2x256xf32>
    %87 = vector.shape_cast %86 : vector<2x256xf32> to vector<2x1x256xf32>
    %c0_37 = arith.constant 0 : index
    %c12 = arith.constant 12 : index
    %c0_38 = arith.constant 0 : index
    %88 = vector.load %arg3[%c0_37, %c12, %c0_38] : memref<1x16x256xf32, #tpu.memory_space<vmem>>, vector<1x4x256xf32>
    %89 = vector.shape_cast %88 : vector<1x4x256xf32> to vector<4x256xf32>
    %90 = vector.shape_cast %89 : vector<4x256xf32> to vector<1x4x256xf32>
    %c0_39 = arith.constant 0 : index
    %c12_40 = arith.constant 12 : index
    %c0_41 = arith.constant 0 : index
    %91 = vector.load %arg4[%c0_39, %c12_40, %c0_41] : memref<1x16x256xf32, #tpu.memory_space<vmem>>, vector<1x4x256xf32>
    %92 = vector.shape_cast %91 : vector<1x4x256xf32> to vector<4x256xf32>
    %93 = vector.shape_cast %92 : vector<4x256xf32> to vector<1x4x256xf32>
    %94 = vector.broadcast %84 : vector<2x1x256xf32> to vector<2x4x256xf32>
    %95 = vector.broadcast %90 : vector<1x4x256xf32> to vector<2x4x256xf32>
    %96 = arith.mulf %94, %95 : vector<2x4x256xf32>
    %97 = vector.broadcast %87 : vector<2x1x256xf32> to vector<2x4x256xf32>
    %98 = vector.broadcast %93 : vector<1x4x256xf32> to vector<2x4x256xf32>
    %99 = arith.mulf %97, %98 : vector<2x4x256xf32>
    %100 = arith.subf %96, %99 : vector<2x4x256xf32>
    %101 = vector.broadcast %84 : vector<2x1x256xf32> to vector<2x4x256xf32>
    %102 = vector.broadcast %93 : vector<1x4x256xf32> to vector<2x4x256xf32>
    %103 = arith.mulf %101, %102 : vector<2x4x256xf32>
    %104 = vector.broadcast %87 : vector<2x1x256xf32> to vector<2x4x256xf32>
    %105 = vector.broadcast %90 : vector<1x4x256xf32> to vector<2x4x256xf32>
    %106 = arith.mulf %104, %105 : vector<2x4x256xf32>
    %107 = arith.addf %103, %106 : vector<2x4x256xf32>
    %108 = arith.addf %80, %100 : vector<2x4x256xf32>
    %109 = arith.addf %81, %107 : vector<2x4x256xf32>
    %c0_42 = arith.constant 0 : index
    %c0_43 = arith.constant 0 : index
    %c0_44 = arith.constant 0 : index
    %c0_45 = arith.constant 0 : index
    %110 = vector.load %arg5[%c0_42, %c0_43, %c0_44, %c0_45] : memref<1x2x8x256xf32, #tpu.memory_space<vmem>>, vector<1x2x4x256xf32>
    %111 = vector.shape_cast %110 : vector<1x2x4x256xf32> to vector<2x4x256xf32>
    %112 = vector.shape_cast %108 : vector<2x4x256xf32> to vector<1x2x4x256xf32>
    tpu.vector_store %arg5[%c0_42, %c0_43, %c0_44, %c0_45], %112 {strides = array<i32>} : memref<1x2x8x256xf32, #tpu.memory_space<vmem>>, vector<1x2x4x256xf32>,
    %c0_46 = arith.constant 0 : index
    %c0_47 = arith.constant 0 : index
    %c4_48 = arith.constant 4 : index
    %c0_49 = arith.constant 0 : index
    %113 = vector.load %arg5[%c0_46, %c0_47, %c4_48, %c0_49] : memref<1x2x8x256xf32, #tpu.memory_space<vmem>>, vector<1x2x4x256xf32>
    %114 = vector.shape_cast %113 : vector<1x2x4x256xf32> to vector<2x4x256xf32>
    %115 = vector.shape_cast %109 : vector<2x4x256xf32> to vector<1x2x4x256xf32>
    tpu.vector_store %arg5[%c0_46, %c0_47, %c4_48, %c0_49], %115 {strides = array<i32>} : memref<1x2x8x256xf32, #tpu.memory_space<vmem>>, vector<1x2x4x256xf32>,
    return
  }
  func.func @transform_0(%arg0: i32) -> (i32, i32, i32) {
    %c0_i32 = arith.constant 0 : i32
    %c0_i32_0 = arith.constant 0 : i32
    %c0_i32_1 = arith.constant 0 : i32
    return %arg0, %c0_i32, %c0_i32_0 : i32, i32, i32
  }
  func.func @transform_1(%arg0: i32) -> (i32, i32, i32) {
    %c0_i32 = arith.constant 0 : i32
    %c0_i32_0 = arith.constant 0 : i32
    %c0_i32_1 = arith.constant 0 : i32
    return %arg0, %c0_i32, %c0_i32_0 : i32, i32, i32
  }
  func.func @transform_2(%arg0: i32) -> (i32, i32, i32) {
    %c0_i32 = arith.constant 0 : i32
    %c0_i32_0 = arith.constant 0 : i32
    %c0_i32_1 = arith.constant 0 : i32
    return %arg0, %c0_i32, %c0_i32_0 : i32, i32, i32
  }
  func.func @transform_3(%arg0: i32) -> (i32, i32, i32) {
    %c0_i32 = arith.constant 0 : i32
    %c0_i32_0 = arith.constant 0 : i32
    %c0_i32_1 = arith.constant 0 : i32
    return %arg0, %c0_i32, %c0_i32_0 : i32, i32, i32
  }
  func.func @transform_4(%arg0: i32) -> (i32, i32, i32, i32) {
    %c0_i32 = arith.constant 0 : i32
    %c0_i32_0 = arith.constant 0 : i32
    %c0_i32_1 = arith.constant 0 : i32
    %c0_i32_2 = arith.constant 0 : i32
    return %arg0, %c0_i32, %c0_i32_0, %c0_i32_1 : i32, i32, i32, i32
  }
}

</mosaic_0001>

<bundles_post_ra>
// kernel: reverse.1
= control target key start
LH: loop header
LB: loop body
LE: loop exit
PB: predicated region body
PF: predicated region fallthrough
CT: control target
= control target key end

     0   :  { %v104_v3 = vlaneseq  ;;  %v110_v18 = vld [vmem:[#allocation0 + $0x7] ss:$-1 sm:$0xff]  ;;  %v138_v19 = vld [vmem:[#allocation0 + $0x1f] ss:$-1 sm:$0xff]  ;;  %v166_v22 = vld [vmem:[#allocation0 + $0x37] ss:$-1 sm:$0xff]  ;;  %s617_s0 = inlined_call_operand.vmem [shape: f32[2,4,32,15], index: 0, kind: input, shape index: {}]   ;;  %s618_s1 = inlined_call_operand.vmem [shape: f32[2,4,32,15], index: 1, kind: output, shape index: {}]  }
   0x1   :  { %v60_v0 = vld [vmem:[%s617_s0] sm:$0xff]  ;;  %v62_v1 = vld [vmem:[%s617_s0 + $0x8] sm:$0xff]  ;;  %v64_v2 = vld [vmem:[%s617_s0 + $0x10] sm:$0xff]  ;;  %v111_v20 = vrot.slane %v110_v18, 1  ;;  %v139_v21 = vrot.slane %v138_v19, 1  ;;  %v167_v24 = vrot.slane %v166_v22, 1 }
   0x2   :  { %61 = vst [vmem:[#allocation0 + $0x8] sm:$0xff] %v60_v0  ;;  %63 = vst [vmem:[#allocation0 + $0x10] sm:$0xff] %v62_v1  ;;  %v66_v4 = vld [vmem:[%s617_s0 + $0x18] sm:$0xff]  ;;  %v68_v5 = vld [vmem:[%s617_s0 + $0x20] sm:$0xff]  ;;  %v513_v10 = vshrl.u32 %v104_v3, 7 }
   0x3   :  { %65 = vst [vmem:[#allocation0 + $0x20] sm:$0xff] %v64_v2  ;;  %v70_v6 = vld [vmem:[%s617_s0 + $0x28] sm:$0xff]  ;;  %67 = vst [vmem:[#allocation0 + $0x28] sm:$0xff] %v66_v4  ;;  %v72_v7 = vld [vmem:[%s617_s0 + $0x30] sm:$0xff] }
   0x4   :  { %69 = vst [vmem:[#allocation0 + $0x38] sm:$0xff] %v68_v5  ;;  %71 = vst [vmem:[#allocation0 + $0x40] sm:$0xff] %v70_v6  ;;  %v74_v8 = vld [vmem:[%s617_s0 + $0x38] sm:$0xff]  ;;  %v76_v9 = vld [vmem:[%s617_s0 + $0x40] sm:$0xff]  ;;  %vm106_vm0 = vcmp.lt.s32.totalorder %v513_v10, 7 }
   0x5   :  { %73 = vst [vmem:[#allocation0 + $0x50] sm:$0xff] %v72_v7  ;;  %75 = vst [vmem:[#allocation0 + $0x58] sm:$0xff] %v74_v8  ;;  %v78_v11 = vld [vmem:[%s617_s0 + $0x48] sm:$0xff]  ;;  %v80_v12 = vld [vmem:[%s617_s0 + $0x50] sm:$0xff] }
   0x6   :  { %77 = vst [vmem:[#allocation0 + $0x68] sm:$0xff] %v76_v9  ;;  %v82_v13 = vld [vmem:[%s617_s0 + $0x58] sm:$0xff]  ;;  %79 = vst [vmem:[#allocation0 + $0x70] sm:$0xff] %v78_v11  ;;  %v84_v14 = vld [vmem:[%s617_s0 + $0x60] sm:$0xff] }
   0x7   :  { %81 = vst [vmem:[#allocation0 + $0x80] sm:$0xff] %v80_v12  ;;  %83 = vst [vmem:[#allocation0 + $0x88] sm:$0xff] %v82_v13  ;;  %v86_v15 = vld [vmem:[%s617_s0 + $0x68] sm:$0xff]  ;;  %v88_v16 = vld [vmem:[%s617_s0 + $0x70] sm:$0xff] }
   0x8   :  { %85 = vst [vmem:[#allocation0 + $0x98] sm:$0xff] %v84_v14  ;;  %87 = vst [vmem:[#allocation0 + $0xa0] sm:$0xff] %v86_v15  ;;  %v90_v17 = vld [vmem:[%s617_s0 + $0x78] sm:$0xff]  ;;  %v194_v23 = vld [vmem:[#allocation0 + $0x4f] ss:$-1 sm:$0xff] }
   0x9   :  { %89 = vst [vmem:[#allocation0 + $0xb0] sm:$0xff] %v88_v16  ;;  %91 = vst [vmem:[#allocation0 + $0xb8] sm:$0xff] %v90_v17  ;;  %v195_v25 = vrot.slane %v194_v23, 1  ;;  %v222_v26 = vld [vmem:[#allocation0 + $0x67] ss:$-1 sm:$0xff] }
   0xa   :  { %v250_v27 = vld [vmem:[#allocation0 + $0x7f] ss:$-1 sm:$0xff]  ;;  %v97_v28 = vld [vmem:[#allocation0 + $0xf] ss:$-1 sm:$0xff]  ;;  %v102_v29 = vld [vmem:[#allocation0 + $0x17] ss:$-1 sm:$0xff] }
   0xb   :  { %112 = vst [vmem:[#allocation1 + $0x8] sm:$0xff] %v111_v20  ;;  %v115_v30 = vld [vmem:[#allocation0 + $0xf] ss:$-1 sm:$0xff]  ;;  %140 = vst [vmem:[#allocation1 + $0x18] sm:$0xff] %v139_v21  ;;  %v98_v31 = vrot.slane %v97_v28, 1  ;;  %v103_v32 = vrot.slane %v102_v29, 1 }
   0xc   :  { %v116_v33 = vrot.slane %v115_v30, 1  ;;  %v125_v34 = vld [vmem:[#allocation0 + $0x27] ss:$-1 sm:$0xff]  ;;  %168 = vst [vmem:[#allocation1 + $0x28] sm:$0xff] %v167_v24  ;;  %196 = vst [vmem:[#allocation1 + $0x38] sm:$0xff] %v195_v25  ;;  %v223_v35 = vrot.slane %v222_v26, 1 }
   0xd   :  { %v126_v36 = vrot.slane %v125_v34, 1  ;;  %v130_v37 = vld [vmem:[#allocation0 + $0x2f] ss:$-1 sm:$0xff]  ;;  %v143_v38 = vld [vmem:[#allocation0 + $0x27] ss:$-1 sm:$0xff]  ;;  %v251_v39 = vrot.slane %v250_v27, 1 }
   0xe   :  { %99 = vst [vmem:[#allocation1] sm:$0xff] %v98_v31  ;;  %120 = vst.msk [vmem:[#allocation1 + $0x8] sm:$0xff] %vm106_vm0, %v116_v33  ;;  %v131_v40 = vrot.slane %v130_v37, 1  ;;  %v144_v41 = vrot.slane %v143_v38, 1  ;;  %v153_v42 = vld [vmem:[#allocation0 + $0x3f] ss:$-1 sm:$0xff] }
   0xf   :  { %v158_v43 = vld [vmem:[#allocation0 + $0x47] ss:$-1 sm:$0xff]  ;;  %224 = vst [vmem:[#allocation1 + $0x48] sm:$0xff] %v223_v35  ;;  %107 = vst.msk [vmem:[#allocation1] sm:$0xff] %vm106_vm0, %v103_v32  ;;  %v154_v44 = vrot.slane %v153_v42, 1 }
  0x10   :  { %127 = vst [vmem:[#allocation1 + $0x10] sm:$0xff] %v126_v36  ;;  %v159_v45 = vrot.slane %v158_v43, 1  ;;  %v171_v46 = vld [vmem:[#allocation0 + $0x3f] ss:$-1 sm:$0xff]  ;;  %v181_v47 = vld [vmem:[#allocation0 + $0x57] ss:$-1 sm:$0xff] }
  0x11   :  { %252 = vst [vmem:[#allocation1 + $0x58] sm:$0xff] %v251_v39  ;;  %135 = vst.msk [vmem:[#allocation1 + $0x10] sm:$0xff] %vm106_vm0, %v131_v40  ;;  %v172_v48 = vrot.slane %v171_v46, 1  ;;  %v182_v49 = vrot.slane %v181_v47, 1  ;;  %v186_v50 = vld [vmem:[#allocation0 + $0x5f] ss:$-1 sm:$0xff] }
  0x12   :  { %148 = vst.msk [vmem:[#allocation1 + $0x18] sm:$0xff] %vm106_vm0, %v144_v41  ;;  %v199_v51 = vld [vmem:[#allocation0 + $0x57] ss:$-1 sm:$0xff]  ;;  %155 = vst [vmem:[#allocation1 + $0x20] sm:$0xff] %v154_v44  ;;  %v187_v52 = vrot.slane %v186_v50, 1 }
  0x13   :  { %v200_v53 = vrot.slane %v199_v51, 1  ;;  %v209_v54 = vld [vmem:[#allocation0 + $0x6f] ss:$-1 sm:$0xff]  ;;  %v214_v55 = vld [vmem:[#allocation0 + $0x77] ss:$-1 sm:$0xff]  ;;  %163 = vst.msk [vmem:[#allocation1 + $0x20] sm:$0xff] %vm106_vm0, %v159_v45 }
  0x14   :  { %176 = vst.msk [vmem:[#allocation1 + $0x28] sm:$0xff] %vm106_vm0, %v172_v48  ;;  %183 = vst [vmem:[#allocation1 + $0x30] sm:$0xff] %v182_v49  ;;  %v210_v56 = vrot.slane %v209_v54, 1  ;;  %v215_v57 = vrot.slane %v214_v55, 1  ;;  %v227_v58 = vld [vmem:[#allocation0 + $0x6f] ss:$-1 sm:$0xff] }
  0x15   :  { %v237_v59 = vld [vmem:[#allocation0 + $0x87] ss:$-1 sm:$0xff]  ;;  %191 = vst.msk [vmem:[#allocation1 + $0x30] sm:$0xff] %vm106_vm0, %v187_v52  ;;  %204 = vst.msk [vmem:[#allocation1 + $0x38] sm:$0xff] %vm106_vm0, %v200_v53  ;;  %v228_v60 = vrot.slane %v227_v58, 1  ;;  %v376_v20 = vld [vmem:[#allocation1 + $0x8] sm:$0xff] }
  0x16   :  { %v238_v61 = vrot.slane %v237_v59, 1  ;;  %v242_v62 = vld [vmem:[#allocation0 + $0x8f] ss:$-1 sm:$0xff]  ;;  %v255_v63 = vld [vmem:[#allocation0 + $0x87] ss:$-1 sm:$0xff]  ;;  %211 = vst [vmem:[#allocation1 + $0x40] sm:$0xff] %v210_v56 }
  0x17   :  { %v243_v0 = vrot.slane %v242_v62, 1  ;;  %v256_v1 = vrot.slane %v255_v63, 1  ;;  %v265_v2 = vld [vmem:[#allocation0 + $0x9f] ss:$-1 sm:$0xff]  ;;  %v270_v3 = vld [vmem:[#allocation0 + $0xa7] ss:$-1 sm:$0xff] }
  0x18   :  { %219 = vst.msk [vmem:[#allocation1 + $0x40] sm:$0xff] %vm106_vm0, %v215_v57  ;;  %232 = vst.msk [vmem:[#allocation1 + $0x48] sm:$0xff] %vm106_vm0, %v228_v60  ;;  %v266_v4 = vrot.slane %v265_v2, 1  ;;  %v271_v5 = vrot.slane %v270_v3, 1  ;;  %v278_v6 = vld [vmem:[#allocation0 + $0x97] ss:$-1 sm:$0xff] }
  0x19   :  { %239 = vst [vmem:[#allocation1 + $0x50] sm:$0xff] %v238_v61  ;;  %v283_v7 = vld [vmem:[#allocation0 + $0x9f] ss:$-1 sm:$0xff]  ;;  %260 = vst.msk [vmem:[#allocation1 + $0x58] sm:$0xff] %vm106_vm0, %v256_v1  ;;  %v279_v8 = vrot.slane %v278_v6, 1  ;;  %v374_v19 = vld [vmem:[#allocation1] sm:$0xff] }
  0x1a   :  { %247 = vst.msk [vmem:[#allocation1 + $0x50] sm:$0xff] %vm106_vm0, %v243_v0  ;;  %v284_v9 = vrot.slane %v283_v7, 1  ;;  %v293_v11 = vld [vmem:[#allocation0 + $0xb7] ss:$-1 sm:$0xff]  ;;  %v298_v12 = vld [vmem:[#allocation0 + $0xbf] ss:$-1 sm:$0xff]  ;;  %375 = vst [vmem:[%s618_s1] sm:$0xff] %v374_v19 }
  0x1b   :  { %267 = vst [vmem:[#allocation1 + $0x60] sm:$0xff] %v266_v4  ;;  %v294_v13 = vrot.slane %v293_v11, 1  ;;  %v299_v14 = vrot.slane %v298_v12, 1  ;;  %v306_v15 = vld [vmem:[#allocation0 + $0xaf] ss:$-1 sm:$0xff]  ;;  %280 = vst [vmem:[#allocation1 + $0x68] sm:$0xff] %v279_v8 }
  0x1c   :  { %v311_v16 = vld [vmem:[#allocation0 + $0xb7] ss:$-1 sm:$0xff]  ;;  %275 = vst.msk [vmem:[#allocation1 + $0x60] sm:$0xff] %vm106_vm0, %v271_v5  ;;  %v307_v17 = vrot.slane %v306_v15, 1  ;;  %288 = vst.msk [vmem:[#allocation1 + $0x68] sm:$0xff] %vm106_vm0, %v284_v9  ;;  %v380_v22 = vld [vmem:[#allocation1 + $0x18] sm:$0xff] }
  0x1d   :  { %v312_v18 = vrot.slane %v311_v16, 1  ;;  %v378_v21 = vld [vmem:[#allocation1 + $0x10] sm:$0xff]  ;;  %295 = vst [vmem:[#allocation1 + $0x70] sm:$0xff] %v294_v13  ;;  %377 = vst [vmem:[%s618_s1 + $0x8] sm:$0xff] %v376_v20  ;;  %v382_v23 = vld [vmem:[#allocation1 + $0x20] sm:$0xff] }
  0x1e   :  { %379 = vst [vmem:[%s618_s1 + $0x10] sm:$0xff] %v378_v21  ;;  %v384_v24 = vld [vmem:[#allocation1 + $0x28] sm:$0xff]  ;;  %303 = vst.msk [vmem:[#allocation1 + $0x70] sm:$0xff] %vm106_vm0, %v299_v14  ;;  %v386_v25 = vld [vmem:[#allocation1 + $0x30] sm:$0xff] }
  0x1f   :  { %308 = vst [vmem:[#allocation1 + $0x78] sm:$0xff] %v307_v17  ;;  %381 = vst [vmem:[%s618_s1 + $0x18] sm:$0xff] %v380_v22  ;;  %v388_v26 = vld [vmem:[#allocation1 + $0x38] sm:$0xff]  ;;  %v390_v10 = vld [vmem:[#allocation1 + $0x40] sm:$0xff] }
  0x20   :  { %383 = vst [vmem:[%s618_s1 + $0x20] sm:$0xff] %v382_v23  ;;  %385 = vst [vmem:[%s618_s1 + $0x28] sm:$0xff] %v384_v24  ;;  %v392_v27 = vld [vmem:[#allocation1 + $0x48] sm:$0xff]  ;;  %v396_v29 = vld [vmem:[#allocation1 + $0x58] sm:$0xff] }
  0x21   :  { %316 = vst.msk [vmem:[#allocation1 + $0x78] sm:$0xff] %vm106_vm0, %v312_v18  ;;  %387 = vst [vmem:[%s618_s1 + $0x30] sm:$0xff] %v386_v25  ;;  %v394_v28 = vld [vmem:[#allocation1 + $0x50] sm:$0xff] }
  0x22   :  { %389 = vst [vmem:[%s618_s1 + $0x38] sm:$0xff] %v388_v26  ;;  %391 = vst [vmem:[%s618_s1 + $0x40] sm:$0xff] %v390_v10 }
  0x23   :  { %393 = vst [vmem:[%s618_s1 + $0x48] sm:$0xff] %v392_v27  ;;  %395 = vst [vmem:[%s618_s1 + $0x50] sm:$0xff] %v394_v28  ;;  %v398_v30 = vld [vmem:[#allocation1 + $0x60] sm:$0xff]  ;;  %v400_v31 = vld [vmem:[#allocation1 + $0x68] sm:$0xff] }
  0x24   :  { %397 = vst [vmem:[%s618_s1 + $0x58] sm:$0xff] %v396_v29  ;;  %399 = vst [vmem:[%s618_s1 + $0x60] sm:$0xff] %v398_v30 }
  0x25   :  { %401 = vst [vmem:[%s618_s1 + $0x68] sm:$0xff] %v400_v31  ;;  %v402_v32 = vld [vmem:[#allocation1 + $0x70] sm:$0xff] }
  0x26   :  { %403 = vst [vmem:[%s618_s1 + $0x70] sm:$0xff] %v402_v32 }
  0x28   :  { %v404_v33 = vld [vmem:[#allocation1 + $0x78] sm:$0xff] }
  0x29   :  { %405 = vst [vmem:[%s618_s1 + $0x78] sm:$0xff] %v404_v33 }

// kernel: a_call__.1
= control target key start
LH: loop header
LB: loop body
LE: loop exit
PB: predicated region body
PF: predicated region fallthrough
CT: control target
= control target key end

     0   :  { %s1010_s15 = smov 0   ;;  %s1419_s0 = inlined_call_operand.vmem [shape: f32[2,8,256], index: 0, kind: input, shape index: {}]   ;;  %s1420_s1 = inlined_call_operand.vmem [shape: f32[2,8,256], index: 1, kind: input, shape index: {}]   ;;  %s1421_s2 = inlined_call_operand.vmem [shape: f32[2,16,256], index: 2, kind: input, shape index: {}]   ;;  %s1422_s3 = inlined_call_operand.vmem [shape: f32[2,16,256], index: 3, kind: input, shape index: {}]   ;;  %s1423_s4 = inlined_call_operand.vmem [shape: f32[2,2,8,256], index: 4, kind: output, shape index: {}]  }
   0x1 LB: > { %s937_s16 = sadd.s32 4294967295, %s982_s15   ;;  %p941_p0 = scmp.ge.s32.totalorder %s982_s15, 1  ;;  %s982_s15 = sphi %s1010_s15, %s14_s15  }
   0x2   : > { %p192_p1 = scmp.lt.s32.totalorder %s982_s15, 3 }
   0x4   : > { %p193_p2 = pnand %p941_p0, %p192_p1 }
   0x6   : > { %196 = sbr.rel (%p193_p2) target bundleno = 83 (0x53), region = 36 }
   0xd   : > { %p233_p3 = scmp.lt.s32.totalorder %s937_s16, 1  ;;  %v266_v0 = vlaneseq  ;;  %v984_v1 = vmov 1966171168  }
   0xe   : > { %v264_v2 = vunpack.c.l.s4 %v984_v1 }
   0xf   : > { %s1444_s16 = smov (!%p233_p3, %s937_s16), 1  ;;  %v267_v4 = vshrl.u32 %v266_v0, 7 }
  0x10   : > { %v265_v3 = vunpack.c.0.s8 %v264_v2  ;;  %s954_s17 = sshll.u32 %s1444_s16, 4  ;;  %s1032_s24 = sshll.u32 %s1444_s16, 5 }
  0x11   : > { %s1021_s20 = scalar_lea.vmem %s1419_s0, %s954_s17  ;;  %s1026_s23 = scalar_lea.vmem %s1420_s1, %s954_s17  ;;  %v1036_v10 = vsub.s32 0, %v267_v4  ;;  %v1041_v14 = vsub.s32 1, %v267_v4 }
  0x12   : > { %v968_v5 = vld [vmem:[%s1021_s20] ss:$8 sps:$4 sm:$0x33]   ;;  %v1029_v6 = vsub.s32 %v265_v3, %v267_v4  ;;  %v970_v11 = vld [vmem:[%s1021_s20] ss:$8 sps:$4 sm:$0xcc]   ;;  %s1051_s27 = scalar_lea.vmem %s1421_s2, %s1032_s24  ;;  %s1070_s30 = scalar_lea.vmem %s1422_s3, %s1032_s24 }
  0x13   : > { %v969_v7 = vld [vmem:[%s1026_s23] ss:$8 sps:$4 sm:$0x33]   ;;  %v971_v13 = vld [vmem:[%s1026_s23] ss:$8 sps:$4 sm:$0xcc]   ;;  %s1266_s7 = scalar_lea.vmem %s1423_s4, %s1032_s24 }
  0x14   : > { %v269_v8 = vrot.slane %v968_v5, %v1029_v6  ;;  %v296_v9 = vrot.slane %v969_v7, %v1029_v6  ;;  %v1045_v17 = vrot.slane %v970_v11, %v1029_v6  ;;  %v1057_v20 = vrot.slane %v971_v13, %v1029_v6  ;;  %v972_v21 = vld [vmem:[%s1021_s20 + $0x4] ss:$8 sps:$4 sm:$0x33]   ;;  %v1073_v24 = vld [vmem:[%s1051_s27] sm:$0xf] }
  0x15   : > { %v1087_v29 = vld [vmem:[%s1070_s30] sm:$0xf]  ;;  %v1096_v32 = vrot.slane %v972_v21, %v1029_v6  ;;  %v973_v33 = vld [vmem:[%s1026_s23 + $0x4] ss:$8 sps:$4 sm:$0x33]  }
  0x16   : > { %v277_v12 = vrot.slane %v269_v8, %v1029_v6  ;;  %v270_v15 = vcombine.high %v269_v8, %v269_v8  ;;  %v304_v16 = vrot.slane %v296_v9, %v1029_v6  ;;  %v297_v18 = vcombine.high %v296_v9, %v296_v9  ;;  %v974_v42 = vld [vmem:[%s1021_s20 + $0x4] ss:$8 sps:$4 sm:$0xcc]   ;;  %v1148_v54 = vld [vmem:[%s1051_s27 + $0x8] sm:$0xf] }
  0x17   : > { %v399_v26 = vrot.slane %v1045_v17, %v1029_v6  ;;  %v428_v31 = vrot.slane %v1057_v20, %v1029_v6  ;;  %v392_v38 = vcombine.high %v1045_v17, %v1045_v17  ;;  %v557_v40 = vrot.slane %v1096_v32, %v1029_v6  ;;  %v975_v46 = vld [vmem:[%s1026_s23 + $0x4] ss:$8 sps:$4 sm:$0xcc]   ;;  %v1151_v55 = vld [vmem:[%s1070_s30 + $0x8] sm:$0xf] }
  0x18   : > { %v1054_v19 = vrot.slane %v277_v12, %v1036_v10  ;;  %v1061_v22 = vrot.slane %v277_v12, %v1041_v14  ;;  %v1064_v23 = vrot.slane %v270_v15, %v1029_v6  ;;  %v1076_v25 = vrot.slane %v304_v16, %v1036_v10  ;;  %v1134_v49 = vld [vmem:[%s1051_s27] sm:$0xf0]  ;;  %v1159_v58 = vld [vmem:[%s1051_s27 + $0x10] sm:$0xf]  ;;  %v1178_v2 = vld [vmem:[%s1051_s27 + $0x8] sm:$0xf0] }
  0x19   : > { %v1081_v27 = vrot.slane %v304_v16, %v1041_v14  ;;  %v1084_v28 = vrot.slane %v297_v18, %v1029_v6  ;;  %v407_v36 = vcombine.high %v399_v26, %v399_v26  ;;  %v436_v39 = vcombine.high %v428_v31, %v428_v31  ;;  %v1154_v56 = vld [vmem:[%s1070_s30] sm:$0xf0]  ;;  %v1181_v3 = vld [vmem:[%s1070_s30 + $0x10] sm:$0xf]  ;;  %v1193_v13 = vld [vmem:[%s1070_s30 + $0x8] sm:$0xf0] }
  0x1a   : > { %v1091_v30 = vmul.f32 %v1054_v19, %v1073_v24  ;;  %v1101_v34 = vrot.slane %v1064_v23, %v1036_v10  ;;  %v360_v35 = vmul.f32 %v1076_v25, %v1087_v29  ;;  %v1114_v41 = vrot.slane %v973_v33, %v1029_v6  ;;  %v1201_v18 = vld [vmem:[%s1051_s27 + $0x18] sm:$0xf] }
  0x1b   : > { %v1107_v37 = vrot.slane %v1084_v28, %v1036_v10  ;;  %v1123_v45 = vrot.slane %v407_v36, %v1036_v10  ;;  %v1127_v47 = vrot.slane %v407_v36, %v1041_v14  ;;  %v1137_v50 = vrot.slane %v436_v39, %v1036_v10 }
  0x1c   : > { %1430 = vst [vmem:[#allocation2_spill] sm:$0xff] %v1101_v34  ;;  %v1119_v43 = vmul.f32 %v1101_v34, %v1073_v24  ;;  %v364_v44 = vsub.f32 %v1091_v30, %v360_v35  ;;  %v584_v51 = vrot.slane %v1114_v41, %v1029_v6  ;;  %v1142_v52 = vrot.slane %v557_v40, %v1036_v10  ;;  %v1212_v35 = vld [vmem:[%s1070_s30 + $0x18] sm:$0xf] }
  0x1d   : > { %1431 = vst [vmem:[#allocation3_spill] sm:$0xff] %v1107_v37  ;;  %v1131_v48 = vmul.f32 %v1107_v37, %v1087_v29  ;;  %v1145_v53 = vrot.slane %v974_v42, %v1029_v6  ;;  %v462_v57 = vmul.f32 %v1123_v45, %v1134_v49  ;;  %v1162_v59 = vrot.slane %v975_v46, %v1029_v6 }
  0x1e   : > { %v337_v60 = vmul.f32 %v1061_v22, %v1148_v54  ;;  %v361_v61 = vmul.f32 %v1081_v27, %v1151_v55  ;;  %v486_v62 = vmul.f32 %v1137_v50, %v1154_v56  ;;  %v616_v63 = vmul.f32 %v1142_v52, %v1159_v58 }
  0x1f   : > { %v1173_v0 = vrot.slane %v584_v51, %v1036_v10  ;;  %v687_v1 = vrot.slane %v1145_v53, %v1029_v6  ;;  %v716_v4 = vrot.slane %v1162_v59, %v1029_v6  ;;  %v463_v7 = vmul.f32 %v1127_v47, %v1178_v2 }
  0x20   : > { %v365_v5 = vsub.f32 %v337_v60, %v361_v61  ;;  %v1188_v8 = vrot.slane %v436_v39, %v1041_v14  ;;  %v490_v9 = vsub.f32 %v462_v57, %v486_v62  ;;  %v1196_v15 = vrot.slane %v557_v40, %v1041_v14  ;;  %v1217_v39 = vld [vmem:[%s1051_s27 + $0x10] sm:$0xf0]  ;;  %v1233_v62 = vld [vmem:[%s1051_s27 + $0x18] sm:$0xf0] }
  0x21   : > { %v640_v11 = vmul.f32 %v1173_v0, %v1181_v3  ;;  %v695_v12 = vcombine.high %v687_v1, %v687_v1  ;;  %v724_v16 = vcombine.high %v716_v4, %v716_v4  ;;  %v1204_v21 = vrot.slane %v584_v51, %v1041_v14  ;;  %v1228_v60 = vld [vmem:[%s1070_s30 + $0x10] sm:$0xf0] }
  0x22   : > { %v487_v17 = vmul.f32 %v1188_v8, %v1193_v13  ;;  %v510_v30 = vrot.slane %v490_v9, 4  ;;  %v617_v36 = vmul.f32 %v1196_v15, %v1201_v18  ;;  %v406_v1 = vrot.slane %v392_v38, %v1029_v6 }
  0x23   : > { %v644_v31 = vsub.f32 %v616_v63, %v640_v11  ;;  %v1209_v33 = vrot.slane %v695_v12, %v1036_v10  ;;  %v1220_v40 = vrot.slane %v724_v16, %v1036_v10  ;;  %v641_v46 = vmul.f32 %v1204_v21, %v1212_v35  ;;  %v1242_v11 = vld [vmem:[%s1070_s30 + $0x18] sm:$0xf0] }
  0x24   : > { %v491_v42 = vsub.f32 %v463_v7, %v487_v17  ;;  %v1225_v51 = vrot.slane %v695_v12, %v1041_v14  ;;  %v518_v57 = vadd.f32 %v510_v30, %v364_v44  ;;  %v1236_v63 = vrot.slane %v724_v16, %v1041_v14 }
  0x25   : > { %v750_v61 = vmul.f32 %v1209_v33, %v1217_v39  ;;  %v774_v4 = vmul.f32 %v1220_v40, %v1228_v60  ;;  %v645_v9 = vsub.f32 %v617_v36, %v641_v46  ;;  %v408_v30 = vcombine.high %v406_v1, %v406_v1 }
  0x26   : > { %v511_v7 = vrot.slane %v491_v42, 4  ;;  %v751_v44 = vmul.f32 %v1225_v51, %v1233_v62  ;;  %v660_v12 = vadd.f32 %v644_v31, %v518_v57  ;;  %v775_v17 = vmul.f32 %v1236_v63, %v1242_v11 }
  0x27   : > { %v421_v16 = vcombine.high %v1057_v20, %v1057_v20  ;;  %v778_v38 = vsub.f32 %v750_v61, %v774_v4  ;;  %v550_v42 = vcombine.high %v1096_v32, %v1096_v32  ;;  %v577_v36 = vcombine.high %v1114_v41, %v1114_v41 }
  0x28   : > { %v519_v26 = vadd.f32 %v511_v7, %v365_v5  ;;  %v779_v46 = vsub.f32 %v751_v44, %v775_v17  ;;  %v1256_v31 = vrot.slane %v408_v30, %v1036_v10  ;;  %v680_v57 = vcombine.high %v1145_v53, %v1145_v53 }
  0x29   : > { %v435_v37 = vrot.slane %v421_v16, %v1029_v6  ;;  %v798_v1 = vrot.slane %v778_v38, 4  ;;  %v564_v20 = vrot.slane %v550_v42, %v1029_v6  ;;  %v591_v5 = vrot.slane %v577_v36, %v1029_v6 }
  0x2a   : > { %v661_v34 = vadd.f32 %v645_v9, %v519_v26  ;;  %v799_v32 = vrot.slane %v779_v46, 4  ;;  %v464_v61 = vmul.f32 %v1256_v31, %v1134_v49  ;;  %v694_v53 = vrot.slane %v680_v57, %v1029_v6 }
  0x2b   : > { %v437_v41 = vcombine.high %v435_v37, %v435_v37  ;;  %v806_v4 = vadd.f32 %v798_v1, %v660_v12  ;;  %v1272_v26 = vrot.slane %v564_v20, %v1036_v10  ;;  %v1275_v7 = vrot.slane %v591_v5, %v1036_v10 }
  0x2c   : > { %v709_v9 = vcombine.high %v1162_v59, %v1162_v59  ;;  %v807_v44 = vadd.f32 %v799_v32, %v661_v34  ;;  %v696_v37 = vcombine.high %v694_v53, %v694_v53  ;;  %v1284_v16 = vrot.slane %v1064_v23, %v1041_v14 }
  0x2d   : > { %v1280_v17 = vrot.slane %v437_v41, %v1036_v10  ;;  %826 = vst [vmem:[%s1266_s7] sm:$0xf] %v806_v4  ;;  %v618_v12 = vmul.f32 %v1272_v26, %v1159_v58  ;;  %v642_v38 = vmul.f32 %v1275_v7, %v1181_v3  ;;  %v1294_v34 = vrot.slane %v1084_v28, %v1041_v14 }
  0x2e   : > { %v723_v42 = vrot.slane %v709_v9, %v1029_v6  ;;  %827 = vst [vmem:[%s1266_s7 + $0x8] sm:$0xf] %v807_v44  ;;  %v1300_v23 = vrot.slane %v696_v37, %v1036_v10  ;;  %v339_v36 = vmul.f32 %v1284_v16, %v1148_v54  ;;  %v1305_v46 = vrot.slane %v408_v30, %v1041_v14 }
  0x2f   : > { %v488_v59 = vmul.f32 %v1280_v17, %v1154_v56  ;;  %v646_v57 = vsub.f32 %v618_v12, %v642_v38  ;;  %v363_v6 = vmul.f32 %v1294_v34, %v1151_v55  ;;  %v1310_v28 = vrot.slane %v437_v41, %v1041_v14 }
  0x30   : > { %1432 = vst [vmem:[#allocation4_spill] sm:$0xff] %v1305_v46  ;;  %v725_v1 = vcombine.high %v723_v42, %v723_v42  ;;  %v752_v53 = vmul.f32 %v1300_v23, %v1217_v39  ;;  %v465_v4 = vmul.f32 %v1305_v46, %v1178_v2  ;;  %v1317_v9 = vrot.slane %v564_v20, %v1041_v14 }
  0x31   : > { %1433 = vst [vmem:[#allocation5_spill] sm:$0xff] %v1310_v28  ;;  %v492_v32 = vsub.f32 %v464_v61, %v488_v59  ;;  %v367_v44 = vsub.f32 %v339_v36, %v363_v6  ;;  %v489_v12 = vmul.f32 %v1310_v28, %v1193_v13  ;;  %v1325_v41 = vrot.slane %v591_v5, %v1041_v14 }
  0x32   : > { %1434 = vst [vmem:[#allocation6_spill] sm:$0xff] %v1317_v9  ;;  %v1320_v30 = vrot.slane %v725_v1, %v1036_v10  ;;  %v619_v38 = vmul.f32 %v1317_v9, %v1201_v18  ;;  %v1330_v42 = vrot.slane %v696_v37, %v1041_v14  ;;  %v1333_v20 = vrot.slane %v725_v1, %v1041_v14 }
  0x33   : > { %1435 = vst [vmem:[#allocation7_spill] sm:$0xff] %v1325_v41  ;;  %v512_v61 = vrot.slane %v492_v32, 4  ;;  %v493_v59 = vsub.f32 %v465_v4, %v489_v12  ;;  %v643_v36 = vmul.f32 %v1325_v41, %v1212_v35  ;;  %v368_v5 = vmul.f32 %v1054_v19, %v1087_v29 }
  0x34   : > { %v776_v10 = vmul.f32 %v1320_v30, %v1228_v60  ;;  %v1436_v6 = vsub.f32 %v1119_v43, %v1131_v48  ;;  %v753_v37 = vmul.f32 %v1330_v42, %v1233_v62  ;;  %v777_v14 = vmul.f32 %v1333_v20, %v1242_v11 }
  0x35   : > { %v372_v1 = vmul.f32 %v1076_v25, %v1073_v24  ;;  %v513_v12 = vrot.slane %v493_v59, 4  ;;  %v647_v9 = vsub.f32 %v619_v38, %v643_v36  ;;  %v494_v41 = vmul.f32 %v1123_v45, %v1154_v56 }
  0x36   : > { %v520_v32 = vadd.f32 %v512_v61, %v1436_v6  ;;  %v780_v4 = vsub.f32 %v752_v53, %v776_v10  ;;  %v781_v28 = vsub.f32 %v753_v37, %v777_v14  ;;  %v498_v43 = vmul.f32 %v1137_v50, %v1134_v49 }
  0x37   : > { %v376_v46 = vadd.f32 %v372_v1, %v368_v5  ;;  %v521_v61 = vadd.f32 %v513_v12, %v367_v44  ;;  %v648_v6 = vmul.f32 %v1142_v52, %v1181_v3  ;;  %v652_v25 = vmul.f32 %v1173_v0, %v1159_v58 }
  0x38   : > { %v662_v19 = vadd.f32 %v646_v57, %v520_v32  ;;  %v800_v48 = vrot.slane %v780_v4, 4  ;;  %v801_v53 = vrot.slane %v781_v28, 4  ;;  %v502_v38 = vadd.f32 %v498_v43, %v494_v41 }
  0x39   : > { %v782_v45 = vmul.f32 %v1209_v33, %v1228_v60  ;;  %v786_v57 = vmul.f32 %v1220_v40, %v1217_v39  ;;  %v663_v59 = vadd.f32 %v647_v9, %v521_v61  ;;  %v656_v50 = vadd.f32 %v652_v25, %v648_v6 }
  0x3a   : > { %v808_v10 = vadd.f32 %v800_v48, %v662_v19  ;;  %v369_v44 = vmul.f32 %v1061_v22, %v1151_v55  ;;  %v526_v36 = vrot.slane %v502_v38, 4  ;;  %v373_v0 = vmul.f32 %v1081_v27, %v1148_v54 }
  0x3b   : > { %v790_v52 = vadd.f32 %v786_v57, %v782_v45  ;;  %v495_v28 = vmul.f32 %v1127_v47, %v1193_v13  ;;  %v809_v33 = vadd.f32 %v801_v53, %v663_v59  ;;  %v499_v40 = vmul.f32 %v1188_v8, %v1178_v2  ;;  %v1437_v8 = vld [vmem:[#allocation2_spill] sm:$0xff]  ;;  %v1439_v53 = vld [vmem:[#allocation4_spill] sm:$0xff] }
  0x3c   : > { %828 = vst [vmem:[%s1266_s7 + $0x10] sm:$0xf] %v808_v10  ;;  %v649_v9 = vmul.f32 %v1196_v15, %v1212_v35  ;;  %v653_v41 = vmul.f32 %v1204_v21, %v1201_v18  ;;  %v534_v22 = vadd.f32 %v526_v36, %v376_v46  ;;  %v377_v32 = vadd.f32 %v373_v0, %v369_v44  ;;  %v1438_v15 = vld [vmem:[#allocation3_spill] sm:$0xff] }
  0x3d   : > { %v814_v5 = vrot.slane %v790_v52, 4  ;;  %v783_v27 = vmul.f32 %v1225_v51, %v1242_v11  ;;  %829 = vst [vmem:[%s1266_s7 + $0x18] sm:$0xf] %v809_v33  ;;  %v503_v37 = vadd.f32 %v499_v40, %v495_v28  ;;  %v787_v14 = vmul.f32 %v1236_v63, %v1233_v62 }
  0x3e   : > { %v657_v47 = vadd.f32 %v653_v41, %v649_v9  ;;  %v370_v1 = vmul.f32 %v1437_v8, %v1087_v29  ;;  %v664_v4 = vadd.f32 %v656_v50, %v534_v22  ;;  %v374_v12 = vmul.f32 %v1438_v15, %v1073_v24 }
  0x3f   : > { %v496_v21 = vmul.f32 %v1256_v31, %v1154_v56  ;;  %v500_v46 = vmul.f32 %v1280_v17, %v1134_v49  ;;  %v527_v51 = vrot.slane %v503_v37, 4  ;;  %v791_v19 = vadd.f32 %v787_v14, %v783_v27 }
  0x40   : > { %v650_v43 = vmul.f32 %v1272_v26, %v1181_v3  ;;  %v654_v63 = vmul.f32 %v1275_v7, %v1159_v58  ;;  %v822_v48 = vadd.f32 %v814_v5, %v664_v4  ;;  %v378_v29 = vadd.f32 %v374_v12, %v370_v1 }
  0x41   : > { %v504_v61 = vadd.f32 %v500_v46, %v496_v21  ;;  %v784_v24 = vmul.f32 %v1300_v23, %v1228_v60  ;;  %v535_v6 = vadd.f32 %v527_v51, %v377_v32  ;;  %v815_v56 = vrot.slane %v791_v19, 4  ;;  %v1440_v60 = vld [vmem:[#allocation5_spill] sm:$0xff] }
  0x42   : > { %v658_v31 = vadd.f32 %v654_v63, %v650_v43  ;;  %v788_v49 = vmul.f32 %v1320_v30, %v1217_v39  ;;  %v834_v17 = vrot.slane %v822_v48, 4  ;;  %v371_v3 = vmul.f32 %v1284_v16, %v1151_v55  ;;  %v1441_v30 = vld [vmem:[#allocation6_spill] sm:$0xff]  ;;  %v1442_v55 = vld [vmem:[#allocation7_spill] sm:$0xff] }
  0x43   : > { %v528_v25 = vrot.slane %v504_v61, 4  ;;  %v375_v58 = vmul.f32 %v1294_v34, %v1148_v54  ;;  %v665_v26 = vadd.f32 %v657_v47, %v535_v6  ;;  %v497_v38 = vmul.f32 %v1439_v53, %v1193_v13 }
  0x44   : > { %v792_v7 = vadd.f32 %v788_v49, %v784_v24  ;;  %v501_v23 = vmul.f32 %v1440_v60, %v1178_v2  ;;  %842 = vst [vmem:[%s1266_s7] sm:$0xf0] %v834_v17  ;;  %v651_v57 = vmul.f32 %v1441_v30, %v1212_v35  ;;  %v655_v16 = vmul.f32 %v1442_v55, %v1201_v18 }
  0x45   : > { %v536_v45 = vadd.f32 %v528_v25, %v378_v29  ;;  %v379_v39 = vadd.f32 %v375_v58, %v371_v3  ;;  %v823_v10 = vadd.f32 %v815_v56, %v665_v26  ;;  %v785_v13 = vmul.f32 %v1330_v42, %v1242_v11 }
  0x46   : > { %v816_v54 = vrot.slane %v792_v7, 4  ;;  %v505_v34 = vadd.f32 %v501_v23, %v497_v38  ;;  %v789_v2 = vmul.f32 %v1333_v20, %v1233_v62  ;;  %v659_v36 = vadd.f32 %v655_v16, %v651_v57 }
  0x47   : > { %v666_v59 = vadd.f32 %v658_v31, %v536_v45  ;;  %v835_v50 = vrot.slane %v823_v10, 4 }
  0x48   : > { %v529_v44 = vrot.slane %v505_v34, 4  ;;  %v793_v35 = vadd.f32 %v789_v2, %v785_v13 }
  0x49   : > { %v824_v52 = vadd.f32 %v816_v54, %v666_v59  ;;  %843 = vst [vmem:[%s1266_s7 + $0x8] sm:$0xf0] %v835_v50 }
  0x4a   : > { %v537_v0 = vadd.f32 %v529_v44, %v379_v39  ;;  %v817_v28 = vrot.slane %v793_v35, 4 }
  0x4b   : > { %v836_v18 = vrot.slane %v824_v52, 4 }
  0x4c   : > { %v667_v33 = vadd.f32 %v659_v36, %v537_v0 }
  0x4d   : > { %844 = vst [vmem:[%s1266_s7 + $0x10] sm:$0xf0] %v836_v18 }
  0x4e   : > { %v825_v40 = vadd.f32 %v817_v28, %v667_v33 }
  0x50   : > { %v837_v9 = vrot.slane %v825_v40, 4 }
  0x52   : > { %845 = vst [vmem:[%s1266_s7 + $0x18] sm:$0xf0] %v837_v9 }
  0x53 PF: > { %s14_s15 = sadd.s32 1, %s982_s15  }
  0x54   : > { %p11_p4 = scmp.ge.s32.totalorder %s14_s15, 4  }
  0x56   :  { %13 = sbr.rel (!%p11_p4) target bundleno = 1 (0x1), region = 75 }

</bundles_post_ra>
